<compile_context>
chip_gen: v5e
topology: v5e:2x2
jax: 0.10.0
libtpu: 0.0.40
codegen_flags: <defaults>
</compile_context>

<pallas_src>
import functools

import jax
import jax.numpy as jnp
from jax.experimental import pallas as pl
from jax.experimental.pallas import tpu as pltpu


def _round_up(n: int, m: int) -> int:
    return ((n + m - 1) // m) * m


def _mlp_kernel(x_ref, *refs, num_layers, sigmoid_output):
    """Fused MLP on one (TM, d_in) row tile.

    refs = (w0, b0, w1, b1, ..., w_{L-1}, b_{L-1}, o_ref).  The layer loop is
    a static Python loop (unrolled at trace time).  Weights are bf16, biases
    f32; matmuls accumulate in f32 on the MXU; ReLU/sigmoid run in f32.
    """
    o_ref = refs[-1]
    h = x_ref[...].astype(jnp.float32)
    for i in range(num_layers):
        w = refs[2 * i][...]                         # (K_pad, N_pad) bf16
        b = refs[2 * i + 1][...]                     # (1, N_pad)   f32
        h = jnp.dot(h.astype(jnp.bfloat16), w,
                    preferred_element_type=jnp.float32) + b
        if i < num_layers - 1:
            h = jnp.maximum(h, 0.0)                  # ReLU between layers
    if sigmoid_output:
        h = jax.nn.sigmoid(h)
    o_ref[...] = h.astype(o_ref.dtype)


def prepare_mlp_params(params, *, lane=128):
    """Pad & cast weights ONCE (outside the forward path).

    params: list of (W(in,out) f32, b(out,) f32).
    Returns list of (W_pad bf16, b_pad f32) where:
      * layer 0 keeps K = input_dim (x is not padded),
      * hidden output dims are padded to a multiple of `lane` (zero rows/cols,
        zero bias -> ReLU(0)=0 -> zero rows of the next W: exact),
      * the final layer keeps N = output_dim (output written at real width).
    """
    num_layers = len(params)
    prepared = []
    k_pad_prev = params[0][0].shape[0]               # real input_dim, no pad
    for i, (w, b) in enumerate(params):
        k_real, n_real = w.shape
        k_pad = k_pad_prev
        n_pad = n_real if i == num_layers - 1 else _round_up(n_real, lane)
        w_p = (jnp.zeros((k_pad, n_pad), jnp.bfloat16)
               .at[:k_real, :n_real].set(w.astype(jnp.bfloat16)))
        b_p = (jnp.zeros((1, n_pad), jnp.float32)
               .at[0, :n_real].set(b.astype(jnp.float32)))
        prepared.append((w_p, b_p))
        k_pad_prev = n_pad
    return prepared


def mlp_forward(x, prepared_params, *, sigmoid_output=False, tm=1024):
    """Matches MLP.forward: ReLU between layers, none (or sigmoid) on last.

    x: (..., input_dim) f32.  prepared_params: from prepare_mlp_params.
    One fused pallas_call over an M-tiled grid; only the final output is
    written to HBM, at its real (unpadded) width.
    """
    lead_shape = x.shape[:-1]
    d_in = x.shape[-1]
    h = x.reshape(-1, d_in)
    M = h.shape[0]
    num_layers = len(prepared_params)
    out_dim = prepared_params[-1][0].shape[1]        # last layer N is unpadded
    assert prepared_params[0][0].shape[0] == d_in

    # Row tile: multiple of 8 (sublane), capped at `tm`, and small enough that
    # the grid has >= 2 steps when M permits (shards across both TCs on v7x).
    half = max((M + 1) // 2, 1)
    TM = min(tm, _round_up(half, 8))
    grid = (pl.cdiv(M, TM),)                         # ragged last block is OK

    in_specs = [pl.BlockSpec((TM, d_in), lambda i: (i, 0))]
    flat_wb = []
    for (w_p, b_p) in prepared_params:
        # Weights/biases: full-extent blocks, same block every grid step
        # (DMA'd once, resident in VMEM across the whole grid).
        in_specs.append(pl.BlockSpec(w_p.shape, lambda i: (0, 0)))
        in_specs.append(pl.BlockSpec(b_p.shape, lambda i: (0, 0)))
        flat_wb += [w_p, b_p]
    out_spec = pl.BlockSpec((TM, out_dim), lambda i: (i, 0))

    kernel = functools.partial(
        _mlp_kernel, num_layers=num_layers, sigmoid_output=sigmoid_output
    )
    out = pl.pallas_call(
        kernel,
        out_shape=jax.ShapeDtypeStruct((M, out_dim), x.dtype),
        grid=grid,
        in_specs=in_specs,
        out_specs=out_spec,
        compiler_params=pltpu.CompilerParams(
            dimension_semantics=("parallel",)        # shard rows across TCs
        ),
    )(h, *flat_wb)

    return out.reshape(*lead_shape, out_dim)


def init_mlp_params(key, input_dim, hidden_dim, output_dim, num_layers):
    """Deterministic PyTorch-style (uniform +-1/sqrt(fan_in)) init, f32."""
    h = [hidden_dim] * (num_layers - 1)
    dims_in = [input_dim] + h
    dims_out = h + [output_dim]
    params = []
    for n_in, n_out in zip(dims_in, dims_out):
        key, kw, kb = jax.random.split(key, 3)
        bound = 1.0 / (n_in ** 0.5)
        # Stored as (in, out) so the kernel computes x @ W directly.
        w = jax.random.uniform(kw, (n_in, n_out), jnp.float32, -bound, bound)
        b = jax.random.uniform(kb, (n_out,), jnp.float32, -bound, bound)
        params.append((w, b))
    return params


def mlp_reference(x, params, *, sigmoid_output=False):
    """Pure-JAX f32 reference (full precision) for correctness checks."""
    h = x
    num_layers = len(params)
    for i, (w, b) in enumerate(params):
        h = jnp.dot(h, w, precision=jax.lax.Precision.HIGHEST) + b
        if i < num_layers - 1:
            h = jnp.maximum(h, 0.0)
    if sigmoid_output:
        h = jax.nn.sigmoid(h)
    return h


if __name__ == "__main__":
    key = jax.random.PRNGKey(0)
    k_x, k_p, k_x2 = jax.random.split(key, 3)

    # Small shapes consistent with the module: tokens of dim input_dim.
    batch, seq = 2, 8
    input_dim, hidden_dim, output_dim, num_layers = 32, 64, 16, 3
    sigmoid_output = True

    x = jax.random.normal(k_x, (batch, seq, input_dim), jnp.float32)
    params = init_mlp_params(k_p, input_dim, hidden_dim, output_dim, num_layers)
    prepared = prepare_mlp_params(params)            # pad + bf16-cast ONCE

    out = mlp_forward(x, prepared, sigmoid_output=sigmoid_output)
    out = jax.block_until_ready(out)
    ref = mlp_reference(x, params, sigmoid_output=sigmoid_output)
    assert out.shape == (batch, seq, output_dim)
    # bf16 MXU operands vs. f32 HIGHEST reference -> relaxed tolerance.
    assert jnp.allclose(out, ref, atol=3e-2, rtol=3e-2)

    # Second check: M = 600 rows exercises the multi-step grid and the ragged
    # (unpadded) last M block (TM = 304, grid = 2).
    x2 = jax.random.normal(k_x2, (2, 300, input_dim), jnp.float32)
    out2 = mlp_forward(x2, prepared, sigmoid_output=False)
    out2 = jax.block_until_ready(out2)
    ref2 = mlp_reference(x2, params, sigmoid_output=False)
    assert out2.shape == (2, 300, output_dim)
    assert jnp.allclose(out2, ref2, atol=3e-2, rtol=3e-2)

    print("KERNEL_OK")
</pallas_src>

<mosaic_0001>
module attributes {stable_mosaic.version = 11 : i64} {
  func.func @_mlp_kernel(%arg0: i32, %arg1: memref<8x32xf32, #tpu.memory_space<vmem>>, %arg2: memref<32x128xbf16, #tpu.memory_space<vmem>>, %arg3: memref<1x128xf32, #tpu.memory_space<vmem>>, %arg4: memref<128x128xbf16, #tpu.memory_space<vmem>>, %arg5: memref<1x128xf32, #tpu.memory_space<vmem>>, %arg6: memref<128x16xbf16, #tpu.memory_space<vmem>>, %arg7: memref<1x16xf32, #tpu.memory_space<vmem>>, %arg8: memref<8x16xf32, #tpu.memory_space<vmem>>) attributes {dimension_semantics = [#tpu.dimension_semantics<parallel>], iteration_bounds = array<i64: 2>, scalar_prefetch = 0 : i64, scratch_operands = 0 : i64, tpu.core_type = #tpu.core_type<tc>, window_params = [{transform_indices = @transform_0, window_bounds = array<i64: 8, 32>}, {pipeline_mode = #tpu.pipeline_mode<synchronous>, transform_indices = @transform_1, window_bounds = array<i64: 32, 128>}, {pipeline_mode = #tpu.pipeline_mode<synchronous>, transform_indices = @transform_2, window_bounds = array<i64: 1, 128>}, {pipeline_mode = #tpu.pipeline_mode<synchronous>, transform_indices = @transform_3, window_bounds = array<i64: 128, 128>}, {pipeline_mode = #tpu.pipeline_mode<synchronous>, transform_indices = @transform_4, window_bounds = array<i64: 1, 128>}, {pipeline_mode = #tpu.pipeline_mode<synchronous>, transform_indices = @transform_5, window_bounds = array<i64: 128, 16>}, {pipeline_mode = #tpu.pipeline_mode<synchronous>, transform_indices = @transform_6, window_bounds = array<i64: 1, 16>}, {transform_indices = @transform_7, window_bounds = array<i64: 8, 16>}]} {
    %c0 = arith.constant 0 : index
    %c0_0 = arith.constant 0 : index
    %0 = vector.load %arg1[%c0, %c0_0] : memref<8x32xf32, #tpu.memory_space<vmem>>, vector<8x32xf32>
    %c0_1 = arith.constant 0 : index
    %c0_2 = arith.constant 0 : index
    %1 = vector.load %arg2[%c0_1, %c0_2] : memref<32x128xbf16, #tpu.memory_space<vmem>>, vector<32x128xbf16>
    %c0_3 = arith.constant 0 : index
    %c0_4 = arith.constant 0 : index
    %2 = vector.load %arg3[%c0_3, %c0_4] : memref<1x128xf32, #tpu.memory_space<vmem>>, vector<1x128xf32>
    %3 = arith.truncf %0 : vector<8x32xf32> to vector<8x32xbf16>
    %cst = arith.constant dense<0.000000e+00> : vector<8x128xf32>
    %4 = tpu.matmul %3, %1, %cst {dimension_numbers = #tpu.dot_dimension_numbers<[1], [0], [0], [1], [0, 0, 1, 1], [], []>} : vector<8x32xbf16>, vector<32x128xbf16>, vector<8x128xf32> -> vector<8x128xf32>
    %5 = vector.broadcast %2 : vector<1x128xf32> to vector<8x128xf32>
    %6 = arith.addf %4, %5 : vector<8x128xf32>
    %cst_5 = arith.constant 0.000000e+00 : f32
    %7 = vector.broadcast %cst_5 : f32 to vector<8x128xf32>
    %8 = arith.maximumf %6, %7 : vector<8x128xf32>
    %c0_6 = arith.constant 0 : index
    %c0_7 = arith.constant 0 : index
    %9 = vector.load %arg4[%c0_6, %c0_7] : memref<128x128xbf16, #tpu.memory_space<vmem>>, vector<128x128xbf16>
    %c0_8 = arith.constant 0 : index
    %c0_9 = arith.constant 0 : index
    %10 = vector.load %arg5[%c0_8, %c0_9] : memref<1x128xf32, #tpu.memory_space<vmem>>, vector<1x128xf32>
    %11 = arith.truncf %8 : vector<8x128xf32> to vector<8x128xbf16>
    %cst_10 = arith.constant dense<0.000000e+00> : vector<8x128xf32>
    %12 = tpu.matmul %11, %9, %cst_10 {dimension_numbers = #tpu.dot_dimension_numbers<[1], [0], [0], [1], [0, 0, 1, 1], [], []>} : vector<8x128xbf16>, vector<128x128xbf16>, vector<8x128xf32> -> vector<8x128xf32>
    %13 = vector.broadcast %10 : vector<1x128xf32> to vector<8x128xf32>
    %14 = arith.addf %12, %13 : vector<8x128xf32>
    %cst_11 = arith.constant 0.000000e+00 : f32
    %15 = vector.broadcast %cst_11 : f32 to vector<8x128xf32>
    %16 = arith.maximumf %14, %15 : vector<8x128xf32>
    %c0_12 = arith.constant 0 : index
    %c0_13 = arith.constant 0 : index
    %17 = vector.load %arg6[%c0_12, %c0_13] : memref<128x16xbf16, #tpu.memory_space<vmem>>, vector<128x16xbf16>
    %c0_14 = arith.constant 0 : index
    %c0_15 = arith.constant 0 : index
    %18 = vector.load %arg7[%c0_14, %c0_15] : memref<1x16xf32, #tpu.memory_space<vmem>>, vector<1x16xf32>
    %19 = arith.truncf %16 : vector<8x128xf32> to vector<8x128xbf16>
    %cst_16 = arith.constant dense<0.000000e+00> : vector<8x16xf32>
    %20 = tpu.matmul %19, %17, %cst_16 {dimension_numbers = #tpu.dot_dimension_numbers<[1], [0], [0], [1], [0, 0, 1, 1], [], []>} : vector<8x128xbf16>, vector<128x16xbf16>, vector<8x16xf32> -> vector<8x16xf32>
    %21 = vector.broadcast %18 : vector<1x16xf32> to vector<8x16xf32>
    %22 = arith.addf %20, %21 : vector<8x16xf32>
    %23 = arith.negf %22 : vector<8x16xf32>
    %24 = math.exp %23 : vector<8x16xf32>
    %cst_17 = arith.constant 1.000000e+00 : f32
    %25 = vector.broadcast %cst_17 : f32 to vector<8x16xf32>
    %26 = arith.addf %25, %24 : vector<8x16xf32>
    %27 = arith.divf %25, %26 : vector<8x16xf32>
    %c0_18 = arith.constant 0 : index
    %c0_19 = arith.constant 0 : index
    %28 = vector.load %arg8[%c0_18, %c0_19] : memref<8x16xf32, #tpu.memory_space<vmem>>, vector<8x16xf32>
    tpu.vector_store %arg8[%c0_18, %c0_19], %27 {strides = array<i32>} : memref<8x16xf32, #tpu.memory_space<vmem>>, vector<8x16xf32>,
    return
  }
  func.func @transform_0(%arg0: i32) -> (i32, i32) {
    %c0_i32 = arith.constant 0 : i32
    %c0_i32_0 = arith.constant 0 : i32
    return %arg0, %c0_i32 : i32, i32
  }
  func.func @transform_1(%arg0: i32) -> (i32, i32) {
    %c0_i32 = arith.constant 0 : i32
    %c0_i32_0 = arith.constant 0 : i32
    %c0_i32_1 = arith.constant 0 : i32
    return %c0_i32, %c0_i32_0 : i32, i32
  }
  func.func @transform_2(%arg0: i32) -> (i32, i32) {
    %c0_i32 = arith.constant 0 : i32
    %c0_i32_0 = arith.constant 0 : i32
    %c0_i32_1 = arith.constant 0 : i32
    return %c0_i32, %c0_i32_0 : i32, i32
  }
  func.func @transform_3(%arg0: i32) -> (i32, i32) {
    %c0_i32 = arith.constant 0 : i32
    %c0_i32_0 = arith.constant 0 : i32
    %c0_i32_1 = arith.constant 0 : i32
    return %c0_i32, %c0_i32_0 : i32, i32
  }
  func.func @transform_4(%arg0: i32) -> (i32, i32) {
    %c0_i32 = arith.constant 0 : i32
    %c0_i32_0 = arith.constant 0 : i32
    %c0_i32_1 = arith.constant 0 : i32
    return %c0_i32, %c0_i32_0 : i32, i32
  }
  func.func @transform_5(%arg0: i32) -> (i32, i32) {
    %c0_i32 = arith.constant 0 : i32
    %c0_i32_0 = arith.constant 0 : i32
    %c0_i32_1 = arith.constant 0 : i32
    return %c0_i32, %c0_i32_0 : i32, i32
  }
  func.func @transform_6(%arg0: i32) -> (i32, i32) {
    %c0_i32 = arith.constant 0 : i32
    %c0_i32_0 = arith.constant 0 : i32
    %c0_i32_1 = arith.constant 0 : i32
    return %c0_i32, %c0_i32_0 : i32, i32
  }
  func.func @transform_7(%arg0: i32) -> (i32, i32) {
    %c0_i32 = arith.constant 0 : i32
    %c0_i32_0 = arith.constant 0 : i32
    return %arg0, %c0_i32 : i32, i32
  }
}

</mosaic_0001>

<bundles_post_ra>
// kernel: tpu_custom_call.1
= control target key start
LH: loop header
LB: loop body
LE: loop exit
PB: predicated region body
PF: predicated region fallthrough
CT: control target
= control target key end

     0   :  { %s1180_s0 = inlined_call_operand.hbm [shape: f32[16,32], index: 0, kind: input, shape index: {}]   ;;  %s1181_s1 = inlined_call_operand.hbm [shape: bf16[32,128], index: 1, kind: input, shape index: {}]   ;;  %s1182_s2 = inlined_call_operand.vmem [shape: f32[1,128], index: 2, kind: input, shape index: {}]   ;;  %s1183_s3 = inlined_call_operand.vmem [shape: bf16[128,128], index: 3, kind: input, shape index: {}]   ;;  %s1184_s4 = inlined_call_operand.vmem [shape: f32[1,128], index: 4, kind: input, shape index: {}]   ;;  %s1185_s5 = inlined_call_operand.vmem [shape: bf16[128,16], index: 5, kind: input, shape index: {}]   ;;  %s1186_s6 = inlined_call_operand.vmem [shape: f32[1,16], index: 6, kind: input, shape index: {}]   ;;  %s1187_s7 = inlined_call_operand.hbm [shape: f32[16,16], index: 7, kind: output, shape index: {}]  }
   0x1   :  { %1188 = sst [smem:[#allocation11_spill]] %s1181_s1 }
   0x2   :  { %12 = vsyncpa [#allocation3], 0 }
   0x3   :  { %14 = vsyncpa [#allocation3 + $0x1], 0 }
   0x4   :  { %15 = vsyncpa [#allocation6], 0 }
   0x5   :  { %16 = vsyncpa [#allocation4], 0 }
   0x6   :  { %18 = vsyncpa [#allocation4 + $0x1], 0  ;;  %s983_s24 = smov 0   ;;  %s985_s25 = smov 0  }
   0x7   :  { %s987_s26 = smov 0   ;;  %s989_s27 = smov 0  }
   0x8 LB: > { %s1189_s1 = sld [smem:[#allocation11_spill]]  ;;  %s1007_s8 = sadd.s32 4294967295, %s938_s27   ;;  %s938_s27 = sphi %s989_s27, %s1199_s27   ;;  %s934_s26 = sphi %s987_s26, %s1198_s26   ;;  %s930_s25 = sphi %s985_s25, %s1197_s25   ;;  %s926_s24 = sphi %s983_s24, %s1196_s24  }
   0x9   : > { %p637_p0 = scmp.ge.s32.totalorder %s938_s27, 1  ;;  %p45_p1 = scmp.eq.s32.totalorder %s1007_s8, 0 }
   0xa   : > { %p207_p2 = scmp.lt.s32.totalorder %s938_s27, 3  ;;  %s940_s10 = smov [#allocation5]  }
   0xb   : > { %s220_s11 = sshll.u32 %s940_s10, 4  ;;  %s941_s12 = smov 64   ;;  %s221_s11 = int_to_ptr.vmem [resolvable:$true] %s220_s11 }
   0xc   : > { %p1012_p3 = pnand %p637_p0, %p207_p2  ;;  %s942_s13 = smov 4  }
   0xd   : > { %s636_s14 = sadd.s32 4294967294, %s938_s27   ;;  %s1023_s15 = sadd.s32 1, %s938_s27  }
   0xe   : > { %s218_s30 = sshll.u32 %s1189_s1, 4  ;;  %p750_p4 = pneg %p1012_p3  ;;  %s219_s30 = int_to_ptr.hbm [resolvable:$true] %s218_s30 }
   0xf   : > { %s31_s16 = sadd.s32 1, %s934_s26  ;;  %s28_s17 = ssub.s32 %s938_s27, %s1023_s15 }
  0x10   : > { %p751_p6 = pnand %p750_p4, %p45_p1  ;;  %p38_p7 = scmp.ne.s32.totalorder %s934_s26, %s930_s25 }
  0x11   : > { %p29_p8 = scmp.eq.s32.totalorder %s28_s17, 0  ;;  %p39_p9 = scmp.eq.s32.totalorder %s938_s27, 0 }
  0x12   : > { %753 = dma.hbm_to_vmem [thread:$0]  (!%p751_p6), %s219_s30, 256, %s221_s11, [#allocation6], %s941_s12, %s941_s12, %s942_s13  }
  0x13   : > { %p44_p10 = scmp.ne.s32.totalorder %s930_s25, %s926_s24  ;;  %p194_p11 = scmp.eq.s32.totalorder %s1007_s8, 1 }
  0x14   : > { %s1035_s18 = scalar_select %p29_p8, %s934_s26, %s31_s16  }
  0x15   : > { %p1039_p12 = por %p45_p1, %p44_p10  ;;  %p1043_p13 = por %p194_p11, %p38_p7 }
  0x16   : > { %p200_p0 = scmp.eq.s32.totalorder %s636_s14, 1  ;;  %p40_p2 = por %p39_p9, %p38_p7 }
  0x17   : > { %s249_s21 = sand.u32 1, %s934_s26   ;;  %p763_p6 = scmp.lt.s32.totalorder %s938_s27, 2 }
  0x18   : > { %p1048_p4 = por %p200_p0, %p44_p10  ;;  %s640_s23 = sshll.u32 %s249_s21, 3 }
  0x19   : > { %s641_s28 = sshll.u32 %s938_s27, 3  ;;  %s253_s12 = scalar_lea.vmem [#allocation2], %s640_s23 }
  0x1a   : > { %s257_s10 = scalar_lea.hbm %s1180_s0, %s641_s28  ;;  %s261_s13 = sshll.u32 %s253_s12, 4  ;;  %s262_s13 = int_to_ptr.vmem [resolvable:$true] %s261_s13 }
  0x1b   : > { %s259_s11 = sshll.u32 %s257_s10, 4  ;;  %p1057_p8 = pnand %p763_p6, %p40_p2  ;;  %s260_s11 = int_to_ptr.hbm [resolvable:$true] %s259_s11 }
  0x1c   : > { %s250_s16 = scalar_lea.sflag [#allocation3], %s249_s21  ;;  %s838_s17 = sshra.s32 %s260_s11, 4  ;;  %s839_s17 = int_to_ptr.hbm [resolvable:$true] %s838_s17 }
  0x1d   : > { %s840_s1 = scalar_lea.hbm %s839_s17, 8  ;;  %p842_p9 = pneg %p1057_p8 }
  0x1e   : > { %p841_p7 = scmp.ne.s32.totalorder %s839_s17, %s840_s1  ;;  %s845_s23 = scalar_lea.hbm %s1180_s0, 16 }
  0x1f   : > { %p846_p0 = scmp.lt.s32.totalorder %s839_s17, %s1180_s0  ;;  %p847_p2 = scmp.lt.s32.totalorder %s845_s23, %s840_s1 }
  0x20   : > { %p843_p10 = pnand %p842_p9, %p841_p7 }
  0x21   : > { %p848_p6 = por %p847_p2, %p846_p0 }
  0x22   : > { %p844_p11 = pneg %p843_p10 }
  0x24   : > { %p849_p5 = pnand %p848_p6, %p844_p11 }
  0x26   : > { %852 = shalt.err (!%p849_p5)
}
  0x27   : > { %757 = dma.hbm_to_vmem [thread:$0]  (!%p1057_p8), %s260_s11, 128, %s262_s13, %s250_s16  }
  0x28   : > { %270 = sbr.rel (%p1012_p3) target bundleno = 485 (0x1e5), region = 48  ;;  %s1074_s21 = sand.u32 (!%p1012_p3), 1, %s930_s25  }
  0x29   : > { %s643_s12 = sshll.u32 (!%p1012_p3), %s1074_s21, 3  ;;  %s273_s28 = scalar_lea.sflag (!%p1012_p3), [#allocation3], %s1074_s21 }
  0x2a   : > { %s276_s1 = scalar_lea.vmem (!%p1012_p3), [#allocation2], %s643_s12 }
  0x2d   : > { %913 = dma.done.wait (%p1039_p12), %s273_s28, 128  }
  0x2e   : > { %915 = vsyncadd (%p1039_p12), %s273_s28, 4294967168 }
  0x2f   : > { %917 = dma.done.wait (%p45_p1), [#allocation6], 256  }
  0x30   : > { %919 = vsyncadd (%p45_p1), [#allocation6], 4294967040  ;;  %v725_v0 = vld [vmem:[#allocation5 + $0x8] sm:$0xff]  ;;  %v724_v2 = vld [vmem:[#allocation5] sm:$0xff]  ;;  %vm336_vm0 = vcmask 261120   ;;  %s312_s14 = scalar_lea.vmem [#allocation7], %s643_s12 }
  0x31   : > { %v733_v1 = vld [vmem:[%s1183_s3 + $0x38] sm:$0xff]  ;;  %346 = vmatpush.bf16.msra.mxu0 %v725_v0  ;;  %v314_v3 = vld [vmem:[%s276_s1] sm:$0xff]  ;;  %v732_v4 = vld [vmem:[%s1183_s3 + $0x30] sm:$0xff]  ;;  %s721_s1 = sshll.u32 %s1007_s8, 3  ;;  %s553_s19 = sshll.u32 %s312_s14, 4  ;;  %vm538_vm4 = vcmask 130048   ;;  %s554_s19 = int_to_ptr.vmem [resolvable:$true] %s553_s19 }
  0x32   : > { %423 = vmatpush.bf16.msra.mxu1 %v733_v1  ;;  %v320_v5 = vpack.c.bf16 %v314_v3, %v314_v3  ;;  %v731_v6 = vld [vmem:[%s1183_s3 + $0x28] sm:$0xff]  ;;  %v730_v7 = vld [vmem:[%s1183_s3 + $0x20] sm:$0xff]  ;;  %v729_v8 = vld [vmem:[%s1183_s3 + $0x18] sm:$0xff]  ;;  %s551_s13 = scalar_lea.hbm %s1187_s7, %s721_s1  ;;  %s541_s8 = scalar_lea.sflag [#allocation4], %s1074_s21 }
  0x33   : > { %v728_v9 = vld [vmem:[%s1183_s3 + $0x10] sm:$0xff]  ;;  %v727_v10 = vld [vmem:[%s1183_s3 + $0x8] sm:$0xff]  ;;  %v726_v11 = vld [vmem:[%s1183_s3] sm:$0xff]  ;;  %s555_s16 = sshll.u32 %s551_s13, 4  ;;  %s888_s30 = scalar_lea.hbm %s1187_s7, 16  ;;  %s556_s16 = int_to_ptr.hbm [resolvable:$true] %s555_s16 }
  0x34   : > { %v741_v12 = vld [vmem:[%s1185_s5 + $0x38] sm:$0xff]  ;;  %v740_v13 = vld [vmem:[%s1185_s5 + $0x30] sm:$0xff]  ;;  %v739_v14 = vld [vmem:[%s1185_s5 + $0x28] sm:$0xff]  ;;  %s882_s17 = sshra.s32 %s556_s16, 4  ;;  %s883_s17 = int_to_ptr.hbm [resolvable:$true] %s882_s17 }
  0x35   : > { %347 = vmatpush.bf16.msra.mxu0 %v724_v2  ;;  %506 = vmatpush.bf16.msra.mxu2 %v741_v12  ;;  %v738_v15 = vld [vmem:[%s1185_s5 + $0x20] sm:$0xff]  ;;  %v737_v16 = vld [vmem:[%s1185_s5 + $0x18] sm:$0xff]  ;;  %v736_v17 = vld [vmem:[%s1185_s5 + $0x10] sm:$0xff]  ;;  %s884_s29 = scalar_lea.hbm %s883_s17, 8  ;;  %p889_p12 = scmp.lt.s32.totalorder %s883_s17, %s1187_s7 }
  0x36   : > { %424 = vmatpush.bf16.msra.mxu1 %v732_v4  ;;  %v801_v18 = vld [vmem:[%s1182_s2] ss:$0 sm:$0xff]  ;;  %v735_v24 = vld [vmem:[%s1185_s5 + $0x8] sm:$0xff]  ;;  %p885_p1 = scmp.ne.s32.totalorder %s883_s17, %s884_s29  ;;  %p890_p8 = scmp.lt.s32.totalorder %s888_s30, %s884_s29 }
  0x37   : > { %v734_v25 = vld [vmem:[%s1185_s5] sm:$0xff] }
  0x38   : > { %654 = vmatmul.msk.bf16.vlgmr.msra.gmra.mxu0 %vm336_vm0, %v320_v5  ;;  %v802_v26 = vld [vmem:[%s1184_s4] ss:$0 sm:$0xff]  ;;  %p886_p3 = pnand %p885_p1, %p1043_p13  ;;  %p891_p7 = por %p890_p8, %p889_p12 }
  0x39   : > { %507 = vmatpush.bf16.msra.mxu2 %v740_v13  ;;  %v803_v32 = vld [vmem:[%s1186_s6] ss:$0 sm:$0xff] }
  0x3a   : > { %425 = vmatpush.bf16.msra.mxu1 %v731_v6  ;;  %p887_p5 = pneg %p886_p3 }
  0x3c   : > { %p892_p9 = pnand %p891_p7, %p887_p5 }
  0x3d   : > { %508 = vmatpush.bf16.msra.mxu2 %v739_v14 }
  0x3e   : > { %426 = vmatpush.bf16.msra.mxu1 %v730_v7 }
  0x41   : > { %509 = vmatpush.bf16.msra.mxu2 %v738_v15 }
  0x42   : > { %427 = vmatpush.bf16.msra.mxu1 %v729_v8 }
  0x45   : > { %510 = vmatpush.bf16.msra.mxu2 %v737_v16 }
  0x46   : > { %428 = vmatpush.bf16.msra.mxu1 %v728_v9 }
  0x49   : > { %511 = vmatpush.bf16.msra.mxu2 %v736_v17 }
  0x4a   : > { %429 = vmatpush.bf16.msra.mxu1 %v727_v10 }
  0x4d   : > { %512 = vmatpush.bf16.msra.mxu2 %v735_v24 }
  0x4e   : > { %430 = vmatpush.bf16.msra.mxu1 %v726_v11 }
  0x51   : > { %513 = vmatpush.bf16.msra.mxu2 %v734_v25 }
  0xb5   : > { %v349_v19 = vpop.f32.mrf.mxu0 }
  0xb6   : > { %v350_v20 = vadd.f32 %v801_v18, %v349_v19 }
  0xb8   : > { %v353_v21 = vmax.f32 %v350_v20, 0.0 }
  0xba   : > { %v371_v22 = vpack.c.bf16 %v353_v21, %v353_v21 }
  0xbc   : > { %431 = vmatmul.bf16.vlgmr.msra.gmra.mxu1 %v371_v22 }
  0xbd   : > { %v351_v23 = vpop.f32.mrf.mxu0 }
 0x139   : > { %v432_v27 = vpop.f32.mrf.mxu1 }
 0x13a   : > { %v433_v28 = vadd.f32 %v802_v26, %v432_v27 }
 0x13c   : > { %v436_v29 = vmax.f32 %v433_v28, 0.0 }
 0x13e   : > { %v454_v30 = vpack.c.bf16 %v436_v29, %v436_v29 }
 0x140   : > { %514 = vmatmul.bf16.vlgmr.msra.gmra.mxu2 %v454_v30 }
 0x141   : > { %v434_v31 = vpop.f32.mrf.mxu1 }
 0x1c3   : > { %v515_v33 = vpop.f32.mrf.mxu2 }
 0x1c4   : > { %v516_v34 = vadd.f32 %v803_v32, %v515_v33 }
 0x1c6   : > { %v719_v35 = vmul.f32 -1.442695, %v516_v34 }
 0x1c8   : > { %804 = vpow2.f32 %v719_v35 }
 0x1cb   : > { %v517_v36 = vpop.f32.mrf.mxu2 }
 0x1ce   : > { %v805_v37 = vpop.eup %804 }
 0x1cf   : > { %v522_v38 = vadd.f32 1.0, %v805_v37 }
 0x1d1   : > { %806 = vrcp.f32 %v522_v38  ;;  %v534_v42 = vand.u32 2147483648, %v522_v38  ;;  %v532_v44 = vand.u32 2147483647, %v522_v38  ;;  %vm528_vm2 = vweird.f32 %v522_v38 }
 0x1d3   : > { %v535_v46 = vor.u32 1.1754944e-38, %v534_v42  ;;  %vm533_vm5 = vcmp.eq.f32.partialorder %v532_v44, 8.507059e+37 }
 0x1d7   : > { %v807_v39 = vpop.eup %806 }
 0x1d8   : > { %v524_v40 = vmul.f32 %v807_v39, %v522_v38  ;;  %vm529_vm1 = vweird.f32 %v807_v39 }
 0x1d9   : > { %vm530_vm3 = vmor %vm528_vm2, %vm529_vm1 }
 0x1da   : > { %v525_v41 = vsub.f32 1.0, %v524_v40 }
 0x1dc   : > { %v526_v43 = vmul.f32 %v807_v39, %v525_v41 }
 0x1de   : > { %v527_v45 = vadd.f32 %v807_v39, %v526_v43 }
 0x1e0   : > { %v531_v47 = vsel %vm530_vm3, %v807_v39, %v527_v45 }
 0x1e1   : > { %v536_v48 = vsel %vm533_vm5, %v535_v46, %v531_v47 }
 0x1e2   : > { %539 = vst.msk [vmem:[%s312_s14] sm:$0xff] %vm538_vm4, %v536_v48 }
 0x1e3   : > { %895 = shalt.err (!%p892_p9)
}
 0x1e4   : > { %748 = dma.vmem_to_hbm [thread:$0]  (%p1043_p13), %s554_s19, 128, %s556_s16, %s541_s8  }
 0x1e5 PF: > { %s567_s21 = sand.u32 1, %s926_s24   ;;  %p1195_p10 = scmp.ge.s32.totalorder %s938_s27, 2 }
 0x1e6   : > { %s568_s1 = scalar_lea.sflag [#allocation4], %s567_s21 }
 0x1e7   : > { %p759_p11 = pnand %p1195_p10, %p1048_p4 }
 0x1e9   : > { %p760_p0 = pneg %p759_p11 }
 0x1eb   : > { %921 = dma.done.wait (%p760_p0), %s568_s1, 128  }
 0x1ec   : > { %923 = vsyncadd (%p760_p0), %s568_s1, 4294967168  ;;  %p21_p2 = scmp.ge.s32.totalorder %s1023_s15, 4   ;;  %s1196_s24 = smov %s930_s25 }
 0x1ed   : > { %s1197_s25 = smov %s934_s26  ;;  %s1198_s26 = smov %s1035_s18 }
 0x1ee   : > { %s1199_s27 = smov %s1023_s15  ;;  %23 = sbr.rel (!%p21_p2) target bundleno = 8 (0x8), region = 97 }
 0x1f3   :  { %574 = vsyncpa [#allocation3], 1 }
 0x1f4   :  { %576 = vsyncpa [#allocation3 + $0x1], 1 }
 0x1f5   :  { %577 = vsyncpa [#allocation6], 1 }
 0x1f6   :  { %578 = vsyncpa [#allocation4], 1 }
 0x1f7   :  { %580 = vsyncpa [#allocation4 + $0x1], 1 }

</bundles_post_ra>
